<compile_context>
chip_gen: v7x
topology: tpu7x:2x2x1
jax: 0.10.0
libtpu: 0.0.40
codegen_flags: <defaults>
</compile_context>

<pallas_src>
import functools

import jax
import jax.numpy as jnp
from jax import lax
from jax.experimental import pallas as pl
from jax.experimental.pallas import tpu as pltpu


def _lowbias32(x):
    """lowbias32 integer hash (uint32 -> uint32), pure VPU ops."""
    x = x ^ (x >> jnp.uint32(16))
    x = x * jnp.uint32(0x7FEB352D)
    x = x ^ (x >> jnp.uint32(15))
    x = x * jnp.uint32(0x846CA68B)
    x = x ^ (x >> jnp.uint32(16))
    return x


def _locked_dropout_kernel(seed_ref, hid_ref, x_ref, o_ref, *,
                           keep_prob, hidden, chunk_t):
    # seed_ref : scalar-prefetch int32[1] in SMEM
    # hid_ref  : (1, B*H) int32 in VMEM, hid_ref[0, c] == c % H
    # x_ref/o_ref : (Tt, B*H) tile in VMEM
    Tt, BH = x_ref.shape
    t0 = pl.program_id(0) * Tt                       # global row offset of tile

    seed_u = seed_ref[0].astype(jnp.uint32)
    seed_mix = seed_u * jnp.uint32(0x9E3779B9)
    h_cols = hid_ref[...]                            # (1, BH) int32, broadcast over rows
    # Bernoulli(keep_prob) via direct uint32 threshold compare (no float uniform).
    thresh = jnp.uint32(min(int(round(keep_prob * (1 << 32))), (1 << 32) - 1))
    inv_keep = jnp.asarray(1.0 / keep_prob, dtype=x_ref.dtype)
    zero = jnp.asarray(0.0, dtype=x_ref.dtype)

    def do_rows(r0, nrows):
        # Mask entry depends only on (seed, global row t, hidden index h), so it
        # is identical for every batch element, tile, chunk and core assignment.
        rows = lax.broadcasted_iota(jnp.int32, (nrows, BH), 0) + (t0 + r0)
        idx_u = (rows * hidden + h_cols).astype(jnp.uint32)
        bits = _lowbias32(idx_u ^ seed_mix)
        bits = _lowbias32(bits + jnp.uint32(0x85EBCA6B))
        keep = bits < thresh
        xv = x_ref[pl.ds(r0, nrows), :]
        # Select directly between scaled x and 0 in x's dtype (no f32 mask array).
        o_ref[pl.ds(r0, nrows), :] = jnp.where(keep, xv * inv_keep, zero)

    n_full = Tt // chunk_t            # static
    tail = Tt - n_full * chunk_t      # static

    if n_full == 1 and tail == 0:
        do_rows(0, Tt)
    else:
        if n_full > 0:
            def body(c, carry):
                do_rows(pl.multiple_of(c * chunk_t, chunk_t), chunk_t)
                return carry
            lax.fori_loop(0, n_full, body, 0)
        if tail > 0:
            do_rows(n_full * chunk_t, tail)


def locked_dropout(x, dropout, seed=0, training=True, block_t=None):
    """JAX/Pallas equivalent of LockedDropout(dropout).forward(x); x is (T, B, H).

    NOTE: vary `seed` per forward call / layer — the mask is a deterministic
    function of (seed, t, h).
    """
    if (not training) or dropout == 0.0:
        return x
    keep_prob = 1.0 - float(dropout)
    T, B, H = x.shape
    BH = B * H
    x2 = x.reshape(T, BH)                       # free view for row-major (T, B, H)

    itemsize = x.dtype.itemsize
    pack = max(8, 32 // itemsize)               # sublane pack: 8 f32, 16 bf16, 32 int8
    row_bytes = BH * itemsize

    # Generation-aware VMEM budget: ~3/4 of physical VMEM as the scoped limit,
    # I/O tiles at ~1/8 of physical VMEM (16 MiB on v5e/v6e, 8 MiB on v7x).
    try:
        cap = int(getattr(pltpu.get_tpu_info(), "vmem_capacity_bytes",
                          64 * 1024 * 1024))
    except Exception:
        cap = 64 * 1024 * 1024                  # conservative (v7x-sized) fallback
    vmem_limit = (cap * 3) // 4
    tile_target = cap // 8

    # Inner-chunk rows: ~1 MiB of 32-bit hash temporaries per chunk.
    chunk_t = max(pack, (((1 << 18) // max(1, BH)) // pack) * pack)

    if block_t is None:
        block_t = max(chunk_t,
                      ((tile_target // max(1, row_bytes)) // chunk_t) * chunk_t)
    else:
        block_t = max(chunk_t, (int(block_t) // chunk_t) * chunk_t)

    if block_t >= T:
        # Prefer >= 2 grid steps so both v7x TensorCores get a share of the
        # "parallel" axis; otherwise fall back to a single full-extent block.
        half = (-(-((T + 1) // 2) // chunk_t)) * chunk_t
        block_t = half if half < T else T

    grid = (pl.cdiv(T, block_t),)

    seed_arr = jnp.asarray([seed], dtype=jnp.int32)
    # h index (col % H) for every flattened column: lets the kernel hash (t, h)
    # only, preserving the locked-over-batch mask on the (T, B*H) layout.
    h_ids = jnp.tile(jnp.arange(H, dtype=jnp.int32), B).reshape(1, BH)

    kernel = functools.partial(_locked_dropout_kernel, keep_prob=keep_prob,
                               hidden=H, chunk_t=chunk_t)

    # TODO(synk): optional in-place variant via input_output_aliases={2: 0} for
    # callers that donate x (footprint win only; HBM traffic is unchanged).
    y2 = pl.pallas_call(
        kernel,
        out_shape=jax.ShapeDtypeStruct((T, BH), x.dtype),
        grid_spec=pltpu.PrefetchScalarGridSpec(
            num_scalar_prefetch=1,
            grid=grid,
            # index_maps receive (grid_idx, *prefetch_refs)
            in_specs=[
                pl.BlockSpec((1, BH), lambda i, seed_ref: (0, 0)),
                pl.BlockSpec((block_t, BH), lambda i, seed_ref: (i, 0)),
            ],
            out_specs=pl.BlockSpec((block_t, BH), lambda i, seed_ref: (i, 0)),
        ),
        compiler_params=pltpu.CompilerParams(
            dimension_semantics=("parallel",),
            vmem_limit_bytes=vmem_limit,
        ),
    )(seed_arr, h_ids, x2)
    return y2.reshape(T, B, H)


if __name__ == "__main__":
    key = jax.random.PRNGKey(0)
    T, B, H = 8, 2, 32
    dropout = 0.5

    x = jax.random.normal(key, (T, B, H), dtype=jnp.float32)

    # Training mode: apply locked (variational) dropout.
    y = jax.block_until_ready(locked_dropout(x, dropout, seed=1234, training=True))

    # Sanity checks of LockedDropout semantics:
    # 1) output values are either 0 or x / keep_prob
    ratio = jnp.where(x != 0, y / x, 1.0 / (1.0 - dropout))
    ok_vals = bool(
        jnp.all(
            jnp.isclose(ratio, 0.0, atol=1e-6)
            | jnp.isclose(ratio, 1.0 / (1.0 - dropout), atol=1e-4)
        )
    )
    # 2) the mask is shared across the batch axis (axis 1)
    implied_mask = jnp.where(x != 0, y / x, 0.0)
    ok_shared = bool(jnp.all(jnp.abs(implied_mask - implied_mask[:, :1, :]) < 1e-4))
    # 3) eval mode is the identity
    y_eval = jax.block_until_ready(locked_dropout(x, dropout, training=False))
    ok_eval = bool(jnp.all(y_eval == x))
    # 4) a different seed gives a different mask (new mask per forward call)
    y2 = jax.block_until_ready(locked_dropout(x, dropout, seed=4321, training=True))
    ok_seed = bool(jnp.any(y2 != y))

    assert ok_vals and ok_shared and ok_eval and ok_seed, (
        ok_vals, ok_shared, ok_eval, ok_seed)
    print("KERNEL_OK")
</pallas_src>

<mosaic_0001>
module attributes {stable_mosaic.version = 11 : i64} {
  func.func @_locked_dropout_kernel(%arg0: i32, %arg1: memref<1xi32, #tpu.memory_space<smem>>, %arg2: memref<1x64xi32, #tpu.memory_space<vmem>>, %arg3: memref<8x64xf32, #tpu.memory_space<vmem>>, %arg4: memref<8x64xf32, #tpu.memory_space<vmem>>) attributes {dimension_semantics = [#tpu.dimension_semantics<parallel>], iteration_bounds = array<i64: 1>, scalar_prefetch = 1 : i64, scratch_operands = 0 : i64, tpu.core_type = #tpu.core_type<tc>, window_params = [{pipeline_mode = #tpu.pipeline_mode<synchronous>, transform_indices = @transform_0, window_bounds = array<i64: 1, 64>}, {transform_indices = @transform_1, window_bounds = array<i64: 8, 64>}, {transform_indices = @transform_2, window_bounds = array<i64: 8, 64>}]} {
    %c8_i32 = arith.constant 8 : i32
    %0 = arith.muli %arg0, %c8_i32 : i32
    %c0 = arith.constant 0 : index
    %1 = memref.load %arg1[%c0] : memref<1xi32, #tpu.memory_space<smem>>
    %c-1640531527_i32 = arith.constant -1640531527 : i32
    %2 = arith.muli %1, %c-1640531527_i32 : i32
    %c0_0 = arith.constant 0 : index
    %c0_1 = arith.constant 0 : index
    %3 = vector.load %arg2[%c0_0, %c0_1] : memref<1x64xi32, #tpu.memory_space<vmem>>, vector<1x64xi32>
    %4 = tpu.iota {dimensions = array<i32: 0>} : vector<8x64xi32>
    %c0_i32 = arith.constant 0 : i32
    %5 = arith.addi %0, %c0_i32 : i32
    %6 = vector.broadcast %5 : i32 to vector<8x64xi32>
    %7 = arith.addi %4, %6 : vector<8x64xi32>
    %c32_i32 = arith.constant 32 : i32
    %8 = vector.broadcast %c32_i32 : i32 to vector<8x64xi32>
    %9 = arith.muli %7, %8 : vector<8x64xi32>
    %10 = vector.broadcast %3 : vector<1x64xi32> to vector<8x64xi32>
    %11 = arith.addi %9, %10 : vector<8x64xi32>
    %12 = vector.broadcast %2 : i32 to vector<8x64xi32>
    %13 = arith.xori %11, %12 : vector<8x64xi32>
    %c16_i32 = arith.constant 16 : i32
    %14 = vector.broadcast %c16_i32 : i32 to vector<8x64xi32>
    %15 = arith.shrui %13, %14 : vector<8x64xi32>
    %16 = arith.xori %13, %15 : vector<8x64xi32>
    %c2146121005_i32 = arith.constant 2146121005 : i32
    %17 = vector.broadcast %c2146121005_i32 : i32 to vector<8x64xi32>
    %18 = arith.muli %16, %17 : vector<8x64xi32>
    %c15_i32 = arith.constant 15 : i32
    %19 = vector.broadcast %c15_i32 : i32 to vector<8x64xi32>
    %20 = arith.shrui %18, %19 : vector<8x64xi32>
    %21 = arith.xori %18, %20 : vector<8x64xi32>
    %c-2073254261_i32 = arith.constant -2073254261 : i32
    %22 = vector.broadcast %c-2073254261_i32 : i32 to vector<8x64xi32>
    %23 = arith.muli %21, %22 : vector<8x64xi32>
    %c16_i32_2 = arith.constant 16 : i32
    %24 = vector.broadcast %c16_i32_2 : i32 to vector<8x64xi32>
    %25 = arith.shrui %23, %24 : vector<8x64xi32>
    %26 = arith.xori %23, %25 : vector<8x64xi32>
    %c-2048144789_i32 = arith.constant -2048144789 : i32
    %27 = vector.broadcast %c-2048144789_i32 : i32 to vector<8x64xi32>
    %28 = arith.addi %26, %27 : vector<8x64xi32>
    %c16_i32_3 = arith.constant 16 : i32
    %29 = vector.broadcast %c16_i32_3 : i32 to vector<8x64xi32>
    %30 = arith.shrui %28, %29 : vector<8x64xi32>
    %31 = arith.xori %28, %30 : vector<8x64xi32>
    %c2146121005_i32_4 = arith.constant 2146121005 : i32
    %32 = vector.broadcast %c2146121005_i32_4 : i32 to vector<8x64xi32>
    %33 = arith.muli %31, %32 : vector<8x64xi32>
    %c15_i32_5 = arith.constant 15 : i32
    %34 = vector.broadcast %c15_i32_5 : i32 to vector<8x64xi32>
    %35 = arith.shrui %33, %34 : vector<8x64xi32>
    %36 = arith.xori %33, %35 : vector<8x64xi32>
    %c-2073254261_i32_6 = arith.constant -2073254261 : i32
    %37 = vector.broadcast %c-2073254261_i32_6 : i32 to vector<8x64xi32>
    %38 = arith.muli %36, %37 : vector<8x64xi32>
    %c16_i32_7 = arith.constant 16 : i32
    %39 = vector.broadcast %c16_i32_7 : i32 to vector<8x64xi32>
    %40 = arith.shrui %38, %39 : vector<8x64xi32>
    %41 = arith.xori %38, %40 : vector<8x64xi32>
    %c-2147483648_i32 = arith.constant -2147483648 : i32
    %42 = vector.broadcast %c-2147483648_i32 : i32 to vector<8x64xi32>
    %43 = arith.cmpi ult, %41, %42 : vector<8x64xi32>
    %c0_8 = arith.constant 0 : index
    %c0_9 = arith.constant 0 : index
    %44 = vector.load %arg3[%c0_8, %c0_9] : memref<8x64xf32, #tpu.memory_space<vmem>>, vector<8x64xf32>
    %cst = arith.constant 2.000000e+00 : f32
    %45 = vector.broadcast %cst : f32 to vector<8x64xf32>
    %46 = arith.mulf %44, %45 : vector<8x64xf32>
    %cst_10 = arith.constant 0.000000e+00 : f32
    %47 = vector.broadcast %cst_10 : f32 to vector<8x64xf32>
    %48 = arith.select %43, %46, %47 : vector<8x64xi1>, vector<8x64xf32>
    %c0_11 = arith.constant 0 : index
    %c0_12 = arith.constant 0 : index
    %49 = vector.load %arg4[%c0_11, %c0_12] : memref<8x64xf32, #tpu.memory_space<vmem>>, vector<8x64xf32>
    tpu.vector_store %arg4[%c0_11, %c0_12], %48 {strides = array<i32>} : memref<8x64xf32, #tpu.memory_space<vmem>>, vector<8x64xf32>,
    return
  }
  func.func @transform_0(%arg0: i32, %arg1: memref<1xi32, #tpu.memory_space<smem>>) -> (i32, i32) {
    %c0_i32 = arith.constant 0 : i32
    %c0_i32_0 = arith.constant 0 : i32
    %c0_i32_1 = arith.constant 0 : i32
    return %c0_i32, %c0_i32_0 : i32, i32
  }
  func.func @transform_1(%arg0: i32, %arg1: memref<1xi32, #tpu.memory_space<smem>>) -> (i32, i32) {
    %c0_i32 = arith.constant 0 : i32
    %c0_i32_0 = arith.constant 0 : i32
    return %arg0, %c0_i32 : i32, i32
  }
  func.func @transform_2(%arg0: i32, %arg1: memref<1xi32, #tpu.memory_space<smem>>) -> (i32, i32) {
    %c0_i32 = arith.constant 0 : i32
    %c0_i32_0 = arith.constant 0 : i32
    return %arg0, %c0_i32 : i32, i32
  }
}

</mosaic_0001>

<bundles_post_ra>
// kernel: tpu_custom_call.1
= control target key start
LH: loop header
LB: loop body
LE: loop exit
PB: predicated region body
PF: predicated region fallthrough
CT: control target
= control target key end

     0   :  { %9 = vsyncpa [#allocation5], 0  ;;  %s183_s0 = inlined_call_operand.<no memory space> [shape: s32[1], index: 0, kind: input, shape index: {}]   ;;  %s184_s1 = inlined_call_operand.vmem [shape: s32[1,64], index: 1, kind: input, shape index: {}]   ;;  %s185_s2 = inlined_call_operand.hbm [shape: f32[8,64], index: 2, kind: input, shape index: {}]   ;;  %s186_s3 = inlined_call_operand.hbm [shape: f32[8,64], index: 3, kind: output, shape index: {}]  }
   0x1   :  { %10 = vsyncpa [#allocation6], 0  ;;  %s131_s12 = smov [#allocation4]   ;;  %s83_s16 = scalar_lea.hbm %s185_s2, 128 }
   0x2   :  { %s19_s13 = sshll.u32 %s131_s12, 4  ;;  %p84_p0 = scmp.ne.s32.totalorder %s185_s2, %s83_s16  ;;  %s20_s13 = int_to_ptr.vmem [resolvable:$true] %s19_s13 }
   0x3   :  { %p87_p1 = scmp.lt.u32.totalorder %s83_s16, %s185_s2 }
   0x5   :  { %p89_p2 = pnand %p87_p1, %p84_p0 }
   0x7   :  { %92 = shalt.err (!%p89_p2)
}
   0x8   :  { %s93_s21 = scalar_lea.vmem %s20_s13, 128  ;;  %p98_p4 = scmp.lt.s32.totalorder %s20_s13, %s20_s13 }
   0x9   :  { %p94_p3 = scmp.ne.s32.totalorder %s20_s13, %s93_s21  ;;  %p99_p5 = scmp.lt.s32.totalorder %s93_s21, %s93_s21 }
   0xb   :  { %p100_p6 = por %p99_p5, %p98_p4 }
   0xd   :  { %p101_p7 = pnand %p100_p6, %p94_p3 }
   0xf   :  { %104 = shalt.err (!%p101_p7)
}
  0x10   :  { %22 = dma.hbm_to_vmem [thread:$0]  %s185_s2, 128, %s20_s13, [#allocation5]  }
  0x11   :  { %127 = dma.done.wait [#allocation5], 128  }
  0x12   :  { %128 = vsyncadd [#allocation5], 4294967168  ;;  %v30_v0 = vlaneseq  ;;  %s28_s26 = smul.u32 2654435769, %s183_s0  ;;  %v80_v3 = vld [vmem:[%s184_s1] ss:$0 sm:$0xff] }
  0x13   :  { %v60_v22 = vld [vmem:[#allocation4] sm:$0xff]  ;;  %s132_s0 = smov [#allocation7]   ;;  %vm63_vm0 = vcmask 523264  }
  0x14   :  { %v31_v1 = vshrl.u32 %v30_v0, 7  ;;  %v40_v4 = vstv %s28_s26  ;;  %v61_v24 = vmul.f32 2.0, %v60_v22  ;;  %s71_s1 = sshll.u32 %s132_s0, 4  ;;  %s72_s1 = int_to_ptr.vmem [resolvable:$true] %s71_s1 }
  0x15   :  { %s105_s2 = scalar_lea.vmem %s72_s1, 128  ;;  %p110_p9 = scmp.lt.s32.totalorder %s72_s1, %s72_s1 }
  0x16   :  { %v34_v2 = vmul.u32 32, %v31_v1  ;;  %p106_p8 = scmp.ne.s32.totalorder %s72_s1, %s105_s2  ;;  %p111_p10 = scmp.lt.s32.totalorder %s105_s2, %s105_s2 }
  0x18   :  { %v39_v5 = vadd.s32 %v80_v3, %v34_v2  ;;  %p112_p11 = por %p111_p10, %p110_p9 }
  0x1a   :  { %v41_v6 = vxor.u32 %v40_v4, %v39_v5  ;;  %p113_p12 = pnand %p112_p11, %p106_p8 }
  0x1c   :  { %v42_v7 = vshrl.u32 %v41_v6, 16 }
  0x1e   :  { %v43_v8 = vxor.u32 %v42_v7, %v41_v6 }
  0x20   :  { %v44_v9 = vmul.u32 2146121005, %v43_v8 }
  0x22   :  { %v45_v10 = vshrl.u32 %v44_v9, 15 }
  0x24   :  { %v46_v11 = vxor.u32 %v45_v10, %v44_v9 }
  0x26   :  { %v47_v12 = vmul.u32 2221713035, %v46_v11 }
  0x28   :  { %v48_v13 = vshrl.u32 %v47_v12, 16 }
  0x2a   :  { %v49_v14 = vxor.u32 %v48_v13, %v47_v12 }
  0x2c   :  { %v50_v15 = vadd.s32 2246822507, %v49_v14 }
  0x2e   :  { %v51_v16 = vshrl.u32 %v50_v15, 16 }
  0x30   :  { %v52_v17 = vxor.u32 %v51_v16, %v50_v15 }
  0x32   :  { %v53_v18 = vmul.u32 2146121005, %v52_v17 }
  0x34   :  { %v54_v19 = vshrl.u32 %v53_v18, 15 }
  0x36   :  { %v55_v20 = vxor.u32 %v54_v19, %v53_v18 }
  0x38   :  { %v56_v21 = vmul.u32 2221713035, %v55_v20 }
  0x3a   :  { %v57_v23 = vshrl.u32 %v56_v21, 16 }
  0x3c   :  { %v58_v25 = vxor.u32 %v57_v23, %v56_v21 }
  0x3e   :  { %vm59_vm1 = vcmp.lt.u32.totalorder %v58_v25, 2147483648 }
  0x3f   :  { %v62_v26 = vsel %vm59_vm1, %v61_v24, 0.0 }
  0x40   :  { %64 = vst.msk [vmem:[#allocation7] sm:$0xff] %vm63_vm0, %v62_v26 }
  0x41   :  { %116 = shalt.err (!%p113_p12)
}
  0x42   :  { %s117_s4 = scalar_lea.hbm %s186_s3, 128 }
  0x43   :  { %p118_p13 = scmp.ne.s32.totalorder %s186_s3, %s117_s4  ;;  %p121_p0 = scmp.lt.u32.totalorder %s117_s4, %s186_s3 }
  0x45   :  { %p123_p1 = pnand %p121_p0, %p118_p13 }
  0x47   :  { %126 = shalt.err (!%p123_p1)
}
  0x48   :  { %74 = dma.vmem_to_hbm [thread:$0]  %s72_s1, 128, %s186_s3, [#allocation6]  }
  0x49   :  { %129 = dma.done.wait [#allocation6], 128  }
  0x4a   :  { %130 = vsyncadd [#allocation6], 4294967168 }
  0x4b   :  { %78 = vsyncpa [#allocation5], 1 }
  0x4c   :  { %79 = vsyncpa [#allocation6], 1 }

</bundles_post_ra>
